<compile_context>
chip_gen: v7x
topology: tpu7x:2x2x1
jax: 0.10.0
libtpu: 0.0.40
codegen_flags: <defaults>
</compile_context>

<pallas_src>
import functools

import jax
import jax.numpy as jnp
from jax.experimental import pallas as pl
from jax.experimental.pallas import tpu as pltpu


# Scoped-VMEM budget for the kernel: leaves headroom inside v7x's 64 MiB
# physical VMEM and is far below v5e/v6e's 128 MiB.
_VMEM_BUDGET = 48 << 20
# Target ~1M elements (~4 MiB of f32 compute) of work per grid step.
_TARGET_BLOCK_ELEMS = 1 << 20


def _ssfc_kernel(x_ref, o_ref, *, inv_hw, inv_hw_m1, delta):
    # x_ref: (tile_rows, H*W) block in VMEM.  The whole per-row reduction fits
    # in the block, so mean, variance, sigmoid and the final scale all live in
    # one pass over the data.
    x = x_ref[...].astype(jnp.float32)
    q = jnp.sum(x, axis=-1, keepdims=True) * inv_hw              # spatial mean
    square = (x - q) * (x - q)
    sigma = jnp.sum(square, axis=-1, keepdims=True) * inv_hw_m1  # unbiased var
    # Per-row reciprocal on a (rows, 1) vector, then broadcast-multiply over the
    # tile: avoids a full-tile VALU divide.  (approx=True would push it to the
    # EUP, but the exact form keeps tight agreement with the reference; the
    # kernel is memory-bound either way.)
    inv = pl.reciprocal(2.0 * sigma + delta, approx=False)
    att = square * inv + 0.5
    o_ref[...] = (x * jax.nn.sigmoid(att)).astype(o_ref.dtype)


def _sublane(itemsize):
    # sublane packing: 8 rows for 4-byte, 16 for 2-byte, 32 for 1-byte dtypes
    return {4: 8, 2: 16, 1: 32}.get(itemsize, 8)


def _est_vmem_bytes(rows, hw, itemsize):
    # double-buffered input + output blocks plus ~3 f32-sized intermediates
    return 2 * rows * hw * (2 * itemsize) + 3 * rows * hw * 4


def _choose_tile_rows(nc, hw, itemsize):
    sub = _sublane(itemsize)
    if nc <= sub:
        return nc  # one block covering all rows (full-dim block is always legal)
    rows = max((_TARGET_BLOCK_ELEMS // max(hw, 1)) // sub * sub, sub)
    # never ask for more rows per block than the (sublane-rounded) total
    rows = min(rows, pl.cdiv(nc, sub) * sub)
    # keep the grid >= 2 steps so v7x's two TensorCores both get work
    half = (nc // 2) // sub * sub
    if half >= sub:
        rows = min(rows, half)
    # shrink until the block (with pipeline buffers / intermediates) fits VMEM
    while rows > sub and _est_vmem_bytes(rows, hw, itemsize) > _VMEM_BUDGET:
        rows = max((rows // 2) // sub * sub, sub)
    return rows


def _ssfc_reference(x, delta=0.0001):
    # Pure-JAX reference mirroring the PyTorch forward exactly.
    h, w = x.shape[2], x.shape[3]
    q = jnp.mean(x, axis=(2, 3), keepdims=True)
    square = (x - q) ** 2
    sigma = jnp.sum(square, axis=(2, 3), keepdims=True) / (h * w - 1)
    att_map = square / (2 * sigma + delta) + 0.5
    att_weight = jax.nn.sigmoid(att_map)
    return x * att_weight


def ssfc(x, delta=0.0001):
    """x: (N, C, H, W) array. Returns x * sigmoid(att_map), same shape/dtype."""
    n, c, h, w = x.shape
    hw = h * w
    nc = n * c
    itemsize = jnp.dtype(x.dtype).itemsize

    if _est_vmem_bytes(_sublane(itemsize), hw, itemsize) > _VMEM_BUDGET:
        # TODO(synk): two-pass Pallas scheme (per-row sum / sum-of-squares
        # accumulation over an 'arbitrary' H*W grid axis, then an elementwise
        # apply pass) for spatial sizes whose full row does not fit in VMEM
        # (roughly H=W >= ~480); fall back to pure JAX there for now.
        return _ssfc_reference(x, delta)

    x2d = x.reshape(nc, hw)   # pure layout glue, no data copy in HBM semantics
    rows = _choose_tile_rows(nc, hw, itemsize)
    # Ragged last block: OOB rows are computed on garbage and discarded on
    # write.  All math is per-row, so valid rows are never contaminated, and
    # delta > 0 keeps the divides finite.
    grid = pl.cdiv(nc, rows)

    kernel = functools.partial(
        _ssfc_kernel,
        inv_hw=1.0 / float(hw),
        inv_hw_m1=1.0 / float(max(hw - 1, 1)),
        delta=float(delta),
    )

    out2d = pl.pallas_call(
        kernel,
        out_shape=jax.ShapeDtypeStruct((nc, hw), x.dtype),
        grid_spec=pltpu.PrefetchScalarGridSpec(
            num_scalar_prefetch=0,
            grid=(grid,),
            in_specs=[pl.BlockSpec((rows, hw), lambda i: (i, 0))],
            out_specs=pl.BlockSpec((rows, hw), lambda i: (i, 0)),
        ),
        compiler_params=pltpu.CompilerParams(
            dimension_semantics=("parallel",),
            vmem_limit_bytes=_VMEM_BUDGET,
        ),
    )(x2d)

    return out2d.reshape(n, c, h, w)


if __name__ == "__main__":
    # SSFC has no learned parameters (only the scalar hyperparameter delta).
    key = jax.random.PRNGKey(0)
    x = jax.random.normal(key, (2, 4, 16, 16), dtype=jnp.float32)

    out = jax.block_until_ready(ssfc(x, delta=0.0001))
    ref = _ssfc_reference(x, delta=0.0001)
    assert out.shape == x.shape and out.dtype == x.dtype
    assert jnp.allclose(out, ref, atol=1e-5, rtol=1e-5), "mismatch vs reference"

    # Also exercise the ragged-last-block path (N*C not a multiple of the tile).
    x2 = jax.random.normal(jax.random.PRNGKey(1), (2, 13, 16, 16), dtype=jnp.float32)
    out2 = jax.block_until_ready(ssfc(x2, delta=0.0001))
    ref2 = _ssfc_reference(x2, delta=0.0001)
    assert jnp.allclose(out2, ref2, atol=1e-5, rtol=1e-5), "mismatch (ragged rows)"

    print("KERNEL_OK")
</pallas_src>

<mosaic_0001>
module attributes {stable_mosaic.version = 11 : i64} {
  func.func @_ssfc_kernel(%arg0: i32, %arg1: memref<8x256xf32, #tpu.memory_space<vmem>>, %arg2: memref<8x256xf32, #tpu.memory_space<vmem>>) attributes {dimension_semantics = [#tpu.dimension_semantics<parallel>], iteration_bounds = array<i64: 1>, scalar_prefetch = 0 : i64, scratch_operands = 0 : i64, tpu.core_type = #tpu.core_type<tc>, window_params = [{transform_indices = @transform_0, window_bounds = array<i64: 8, 256>}, {transform_indices = @transform_1, window_bounds = array<i64: 8, 256>}]} {
    %c0 = arith.constant 0 : index
    %c0_0 = arith.constant 0 : index
    %0 = vector.load %arg1[%c0, %c0_0] : memref<8x256xf32, #tpu.memory_space<vmem>>, vector<8x256xf32>
    %cst = arith.constant dense<0.000000e+00> : vector<8xf32>
    %1 = vector.multi_reduction <add>, %0, %cst [1] : vector<8x256xf32> to vector<8xf32>
    %2 = vector.shape_cast %1 : vector<8xf32> to vector<8x1xf32>
    %cst_1 = arith.constant 3.906250e-03 : f32
    %3 = vector.broadcast %cst_1 : f32 to vector<8x1xf32>
    %4 = arith.mulf %2, %3 : vector<8x1xf32>
    %5 = vector.broadcast %4 : vector<8x1xf32> to vector<8x256xf32>
    %6 = arith.subf %0, %5 : vector<8x256xf32>
    %7 = vector.broadcast %4 : vector<8x1xf32> to vector<8x256xf32>
    %8 = arith.subf %0, %7 : vector<8x256xf32>
    %9 = arith.mulf %6, %8 : vector<8x256xf32>
    %cst_2 = arith.constant dense<0.000000e+00> : vector<8xf32>
    %10 = vector.multi_reduction <add>, %9, %cst_2 [1] : vector<8x256xf32> to vector<8xf32>
    %11 = vector.shape_cast %10 : vector<8xf32> to vector<8x1xf32>
    %cst_3 = arith.constant 0.00392156886 : f32
    %12 = vector.broadcast %cst_3 : f32 to vector<8x1xf32>
    %13 = arith.mulf %11, %12 : vector<8x1xf32>
    %cst_4 = arith.constant 2.000000e+00 : f32
    %14 = vector.broadcast %cst_4 : f32 to vector<8x1xf32>
    %15 = arith.mulf %14, %13 : vector<8x1xf32>
    %cst_5 = arith.constant 9.99999974E-5 : f32
    %16 = vector.broadcast %cst_5 : f32 to vector<8x1xf32>
    %17 = arith.addf %15, %16 : vector<8x1xf32>
    %18 = tpu.reciprocal %17 : vector<8x1xf32> -> vector<8x1xf32>
    %19 = vector.broadcast %18 : vector<8x1xf32> to vector<8x256xf32>
    %20 = arith.mulf %9, %19 : vector<8x256xf32>
    %cst_6 = arith.constant 5.000000e-01 : f32
    %21 = vector.broadcast %cst_6 : f32 to vector<8x256xf32>
    %22 = arith.addf %20, %21 : vector<8x256xf32>
    %23 = arith.negf %22 : vector<8x256xf32>
    %24 = math.exp %23 : vector<8x256xf32>
    %cst_7 = arith.constant 1.000000e+00 : f32
    %25 = vector.broadcast %cst_7 : f32 to vector<8x256xf32>
    %26 = arith.addf %25, %24 : vector<8x256xf32>
    %27 = arith.divf %25, %26 : vector<8x256xf32>
    %28 = arith.mulf %0, %27 : vector<8x256xf32>
    %c0_8 = arith.constant 0 : index
    %c0_9 = arith.constant 0 : index
    %29 = vector.load %arg2[%c0_8, %c0_9] : memref<8x256xf32, #tpu.memory_space<vmem>>, vector<8x256xf32>
    tpu.vector_store %arg2[%c0_8, %c0_9], %28 {strides = array<i32>} : memref<8x256xf32, #tpu.memory_space<vmem>>, vector<8x256xf32>,
    return
  }
  func.func @transform_0(%arg0: i32) -> (i32, i32) {
    %c0_i32 = arith.constant 0 : i32
    %c0_i32_0 = arith.constant 0 : i32
    return %arg0, %c0_i32 : i32, i32
  }
  func.func @transform_1(%arg0: i32) -> (i32, i32) {
    %c0_i32 = arith.constant 0 : i32
    %c0_i32_0 = arith.constant 0 : i32
    return %arg0, %c0_i32 : i32, i32
  }
}

</mosaic_0001>

<bundles_post_ra>
// kernel: tpu_custom_call.1
= control target key start
LH: loop header
LB: loop body
LE: loop exit
PB: predicated region body
PF: predicated region fallthrough
CT: control target
= control target key end

     0   :  { %6 = vsyncpa [#allocation3], 0  ;;  %s171_s0 = inlined_call_operand.hbm [shape: f32[8,256], index: 0, kind: input, shape index: {}]   ;;  %s172_s1 = inlined_call_operand.hbm [shape: f32[8,256], index: 1, kind: output, shape index: {}]  }
   0x1   :  { %7 = vsyncpa [#allocation4], 0  ;;  %s135_s6 = smov [#allocation2]   ;;  %s87_s10 = scalar_lea.hbm %s171_s0, 256 }
   0x2   :  { %s14_s7 = sshll.u32 %s135_s6, 4  ;;  %p88_p0 = scmp.ne.s32.totalorder %s171_s0, %s87_s10  ;;  %s15_s7 = int_to_ptr.vmem [resolvable:$true] %s14_s7 }
   0x3   :  { %p91_p1 = scmp.lt.u32.totalorder %s87_s10, %s171_s0 }
   0x5   :  { %p93_p2 = pnand %p91_p1, %p88_p0 }
   0x7   :  { %96 = shalt.err (!%p93_p2)
}
   0x8   :  { %s97_s15 = scalar_lea.vmem %s15_s7, 256  ;;  %p102_p4 = scmp.lt.s32.totalorder %s15_s7, %s15_s7 }
   0x9   :  { %p98_p3 = scmp.ne.s32.totalorder %s15_s7, %s97_s15  ;;  %p103_p5 = scmp.lt.s32.totalorder %s97_s15, %s97_s15 }
   0xb   :  { %p104_p6 = por %p103_p5, %p102_p4 }
   0xd   :  { %p105_p7 = pnand %p104_p6, %p98_p3 }
   0xf   :  { %108 = shalt.err (!%p105_p7)
}
  0x10   :  { %17 = dma.hbm_to_vmem [thread:$0]  %s171_s0, 256, %s15_s7, [#allocation3]  }
  0x11   :  { %131 = dma.done.wait [#allocation3], 256  }
  0x12   :  { %132 = vsyncadd [#allocation3], 4294967040  ;;  %v21_v0 = vld [vmem:[#allocation2] sm:$0xff]  ;;  %v22_v1 = vld [vmem:[#allocation2 + $0x8] sm:$0xff]  ;;  %s136_s0 = smov [#allocation5]  }
  0x13   :  { %v23_v2 = vadd.f32 %v22_v1, %v21_v0  ;;  %s64_s18 = sshll.u32 %s136_s0, 4  ;;  %s65_s18 = int_to_ptr.vmem [resolvable:$true] %s64_s18 }
  0x14   :  { %s109_s19 = scalar_lea.vmem %s65_s18, 256  ;;  %p114_p9 = scmp.lt.s32.totalorder %s65_s18, %s65_s18 }
  0x15   :  { %24 = vadd.xlane.f32.xlu0 %v23_v2  ;;  %p110_p8 = scmp.ne.s32.totalorder %s65_s18, %s109_s19  ;;  %p115_p10 = scmp.lt.s32.totalorder %s109_s19, %s109_s19 }
  0x17   :  { %p116_p11 = por %p115_p10, %p114_p9 }
  0x19   :  { %p117_p12 = pnand %p116_p11, %p110_p8 }
  0xa2   :  { %v25_v3 = vpop.xlane.xlu0 %24 }
  0xa3   :  { %v26_v4 = vmul.f32 0.00390625, %v25_v3 }
  0xa5   :  { %v27_v5 = vsub.f32 %v21_v0, %v26_v4  ;;  %v28_v6 = vsub.f32 %v22_v1, %v26_v4 }
  0xa7   :  { %v29_v7 = vmul.f32 %v27_v5, %v27_v5  ;;  %v30_v8 = vmul.f32 %v28_v6, %v28_v6 }
  0xa9   :  { %v31_v9 = vadd.f32 %v30_v8, %v29_v7 }
  0xab   :  { %32 = vadd.xlane.f32.xlu0 %v31_v9 }
 0x138   :  { %v33_v10 = vpop.xlane.xlu0 %32 }
 0x139   :  { %v34_v11 = vmul.f32 0.003921569, %v33_v10 }
 0x13b   :  { %v35_v12 = vmul.f32 2.0, %v34_v11 }
 0x13d   :  { %v36_v13 = vadd.f32 0.0001, %v35_v12 }
 0x13f   :  { %77 = vrcp.f32 %v36_v13 }
 0x149   :  { %v78_v14 = vpop.eup %77 }
 0x14a   :  { %v38_v15 = vmul.f32 %v78_v14, %v29_v7  ;;  %v39_v16 = vmul.f32 %v78_v14, %v30_v8 }
 0x14c   :  { %v40_v17 = vadd.f32 0.5, %v38_v15  ;;  %v41_v18 = vadd.f32 0.5, %v39_v16 }
 0x14e   :  { %v73_v19 = vmul.f32 -1.442695, %v40_v17  ;;  %v74_v20 = vmul.f32 -1.442695, %v41_v18 }
 0x150   :  { %79 = vpow2.f32 %v73_v19 }
 0x151   :  { %81 = vpow2.f32 %v74_v20 }
 0x15a   :  { %v80_v21 = vpop.eup %79 }
 0x15b   :  { %v82_v22 = vpop.eup %81  ;;  %v48_v23 = vadd.f32 1.0, %v80_v21 }
 0x15c   :  { %v49_v24 = vadd.f32 1.0, %v82_v22 }
 0x15d   :  { %83 = vrcp.f32 %v48_v23 }
 0x15e   :  { %85 = vrcp.f32 %v49_v24 }
 0x167   :  { %v84_v25 = vpop.eup %83 }
 0x168   :  { %v86_v26 = vpop.eup %85  ;;  %v54_v27 = vmul.f32 %v84_v25, %v21_v0 }
 0x169   :  { %v55_v28 = vmul.f32 %v86_v26, %v22_v1 }
 0x16a   :  { %56 = vst [vmem:[#allocation5] sm:$0xff] %v54_v27 }
 0x16b   :  { %57 = vst [vmem:[#allocation5 + $0x8] sm:$0xff] %v55_v28 }
 0x16c   :  { %120 = shalt.err (!%p117_p12)
}
 0x16d   :  { %s121_s22 = scalar_lea.hbm %s172_s1, 256 }
 0x16e   :  { %p122_p13 = scmp.ne.s32.totalorder %s172_s1, %s121_s22  ;;  %p125_p0 = scmp.lt.u32.totalorder %s121_s22, %s172_s1 }
 0x170   :  { %p127_p1 = pnand %p125_p0, %p122_p13 }
 0x172   :  { %130 = shalt.err (!%p127_p1)
}
 0x173   :  { %67 = dma.vmem_to_hbm [thread:$0]  %s65_s18, 256, %s172_s1, [#allocation4]  }
 0x174   :  { %133 = dma.done.wait [#allocation4], 256  }
 0x175   :  { %134 = vsyncadd [#allocation4], 4294967040 }
 0x176   :  { %71 = vsyncpa [#allocation3], 1 }
 0x177   :  { %72 = vsyncpa [#allocation4], 1 }

</bundles_post_ra>
